<compile_context>
chip_gen: v5e
topology: v5e:2x2
jax: 0.10.0
libtpu: 0.0.40
codegen_flags: <defaults>
</compile_context>

<pallas_src>
import jax
import jax.numpy as jnp
import numpy as np
from jax.experimental import pallas as pl
from jax.experimental.pallas import tpu as pltpu

DEPTH = 3
N_NODE = 2 ** DEPTH - 1      # 7
N_LEAF = 2 ** DEPTH          # 8
N_LABEL = 10

# Tile over rows (batch*n_token). With D=32 f32 a 2048-row tile moves 256 KiB
# per input DMA step, comfortably amortizing per-step overhead while staying
# far under the scoped-VMEM default on every generation (v5e 16 MiB,
# v6e/v7x 32 MiB).
TM_MAX = 2048


def _build_tree_tables(depth):
    """Fused static routing tables.

    For layer k and leaf l the reference consumes node prob d[node(k,l)] if the
    k-th routing bit of l is 0 (left), else 1 - d[node(k,l)].  That per-layer
    factor equals  dec @ (sel_k * (1 - 2*bit_k)) + bit_k,  so all DEPTH layers
    fuse into one matrix:

      A : (n_node, depth*n_leaf)   c : (1, depth*n_leaf)

    and routing = prod_k (dec @ A + c)[:, k*n_leaf:(k+1)*n_leaf].
    """
    n_node = 2 ** depth - 1
    n_leaf = 2 ** depth
    a = np.zeros((n_node, depth * n_leaf), np.float32)
    c = np.zeros((1, depth * n_leaf), np.float32)
    for k in range(depth):
        for leaf in range(n_leaf):
            node = (2 ** k - 1) + (leaf >> (depth - k))
            bit = (leaf >> (depth - 1 - k)) & 1
            col = k * n_leaf + leaf
            a[node, col] = 1.0 - 2.0 * bit   # +1 for left branch, -1 for right
            c[0, col] = float(bit)           # 0 for left, +1 for right
    return jnp.asarray(a), jnp.asarray(c)


def tree_kernel(x_ref, w_ref, b_ref, a_ref, c_ref, pi_ref, out_ref):
    # fc + sigmoid
    x = x_ref[...]                                                     # (TM, D)
    logits = jnp.dot(x, w_ref[...], preferred_element_type=jnp.float32) + b_ref[...]
    dec = jax.nn.sigmoid(logits)                                       # (TM, n_node)

    # One fused MXU pass for all tree layers, then the routing product.
    f = jnp.dot(dec, a_ref[...], preferred_element_type=jnp.float32) + c_ref[...]
    routing = (f[:, 0:N_LEAF]
               * f[:, N_LEAF:2 * N_LEAF]
               * f[:, 2 * N_LEAF:3 * N_LEAF])                          # (TM, n_leaf)

    out_ref[...] = jnp.dot(routing, pi_ref[...],
                           preferred_element_type=jnp.float32)         # (TM, n_label)


def tree_forward(x, w_t, bias, pi, a_tbl, c_tbl):
    batch, n_token, d = x.shape
    m = batch * n_token
    x2 = x.reshape(m, d)

    # Pick a tile over M and pad so every grid block is full.
    m8 = ((m + 7) // 8) * 8
    tm = min(TM_MAX, m8)
    m_pad = pl.cdiv(m, tm) * tm
    if m_pad != m:
        x2 = jnp.pad(x2, ((0, m_pad - m), (0, 0)))
    grid = (m_pad // tm,)

    # VMEM budget: double-buffered x tile + output tile + constants (headroom x4).
    step_bytes = 2 * (tm * d * 4 + tm * N_LABEL * 4) + 64 * 1024
    vmem_limit = int(min(max(4 * step_bytes, 4 * 1024 * 1024), 32 * 1024 * 1024))

    cost = pl.CostEstimate(
        flops=2 * m_pad * (d * N_NODE + N_NODE * DEPTH * N_LEAF + N_LEAF * N_LABEL),
        transcendentals=m_pad * N_NODE,
        bytes_accessed=m_pad * (d + N_LABEL) * 4
        + (d * N_NODE + N_NODE + N_NODE * DEPTH * N_LEAF
           + DEPTH * N_LEAF + N_LEAF * N_LABEL) * 4,
    )

    out = pl.pallas_call(
        tree_kernel,
        out_shape=jax.ShapeDtypeStruct((m_pad, N_LABEL), jnp.float32),
        grid=grid,
        in_specs=[
            pl.BlockSpec((tm, d), lambda i: (i, 0)),
            pl.BlockSpec((d, N_NODE), lambda i: (0, 0)),
            pl.BlockSpec((1, N_NODE), lambda i: (0, 0)),
            pl.BlockSpec((N_NODE, DEPTH * N_LEAF), lambda i: (0, 0)),
            pl.BlockSpec((1, DEPTH * N_LEAF), lambda i: (0, 0)),
            pl.BlockSpec((N_LEAF, N_LABEL), lambda i: (0, 0)),
        ],
        out_specs=pl.BlockSpec((tm, N_LABEL), lambda i: (i, 0)),
        compiler_params=pltpu.CompilerParams(
            dimension_semantics=("parallel",),
            vmem_limit_bytes=vmem_limit,
        ),
        cost_estimate=cost,
    )(x2, w_t, bias, a_tbl, c_tbl, pi)

    return out[:m].reshape(batch, n_token, N_LABEL)


def tree_reference(x, w_t, bias, pi, depth):
    """Pure-JAX transcription of the PyTorch forward (for verification)."""
    dec = jax.nn.sigmoid(jnp.einsum("btd,dn->btn", x, w_t) + bias[0])
    dec = dec[..., None]
    dec = jnp.concatenate([dec, 1.0 - dec], axis=3)
    b, t = x.shape[:2]
    rp = jnp.ones((b, t, 1, 1), jnp.float32)
    begin, end = 0, 1
    for _ in range(depth):
        rp = jnp.tile(rp.reshape(b, t, -1, 1), (1, 1, 1, 2))
        rp = rp * dec[:, :, begin:end, :]
        begin, end = end, 2 * end + 1
    rp = rp.reshape(b, t, 2 ** depth)
    return rp @ pi


if __name__ == "__main__":
    batch, n_token, input_d = 2, 8, 32

    key = jax.random.PRNGKey(0)
    kx, kw, kb, kpi = jax.random.split(key, 4)

    x = jax.random.normal(kx, (batch, n_token, input_d), jnp.float32)

    # nn.Linear(input_d, n_node): weight (n_node, input_d), bias (n_node,)
    bound = 1.0 / np.sqrt(input_d)
    w = jax.random.uniform(kw, (N_NODE, input_d), jnp.float32, -bound, bound)
    b = jax.random.uniform(kb, (N_NODE,), jnp.float32, -bound, bound)
    w_t = w.T                                   # (input_d, n_node)
    bias = b.reshape(1, N_NODE)

    # pi = softmax(rand(n_leaf, n_label), dim=1)
    pi = jax.nn.softmax(jax.random.uniform(kpi, (N_LEAF, N_LABEL), jnp.float32), axis=1)

    a_tbl, c_tbl = _build_tree_tables(DEPTH)

    pred = tree_forward(x, w_t, bias, pi, a_tbl, c_tbl)
    pred = jax.block_until_ready(pred)

    ref = tree_reference(x, w_t, bias, pi, DEPTH)
    np.testing.assert_allclose(np.asarray(pred), np.asarray(ref), atol=1e-5, rtol=1e-5)

    print("KERNEL_OK")
</pallas_src>

<mosaic_0001>
module attributes {stable_mosaic.version = 11 : i64} {
  func.func @tree_kernel(%arg0: i32, %arg1: memref<16x32xf32, #tpu.memory_space<vmem>>, %arg2: memref<32x7xf32, #tpu.memory_space<vmem>>, %arg3: memref<1x7xf32, #tpu.memory_space<vmem>>, %arg4: memref<7x24xf32, #tpu.memory_space<vmem>>, %arg5: memref<1x24xf32, #tpu.memory_space<vmem>>, %arg6: memref<8x10xf32, #tpu.memory_space<vmem>>, %arg7: memref<16x10xf32, #tpu.memory_space<vmem>>) attributes {dimension_semantics = [#tpu.dimension_semantics<parallel>], iteration_bounds = array<i64: 1>, scalar_prefetch = 0 : i64, scratch_operands = 0 : i64, tpu.core_type = #tpu.core_type<tc>, window_params = [{transform_indices = @transform_0, window_bounds = array<i64: 16, 32>}, {pipeline_mode = #tpu.pipeline_mode<synchronous>, transform_indices = @transform_1, window_bounds = array<i64: 32, 7>}, {pipeline_mode = #tpu.pipeline_mode<synchronous>, transform_indices = @transform_2, window_bounds = array<i64: 1, 7>}, {pipeline_mode = #tpu.pipeline_mode<synchronous>, transform_indices = @transform_3, window_bounds = array<i64: 7, 24>}, {pipeline_mode = #tpu.pipeline_mode<synchronous>, transform_indices = @transform_4, window_bounds = array<i64: 1, 24>}, {pipeline_mode = #tpu.pipeline_mode<synchronous>, transform_indices = @transform_5, window_bounds = array<i64: 8, 10>}, {transform_indices = @transform_6, window_bounds = array<i64: 16, 10>}]} {
    %c0 = arith.constant 0 : index
    %c0_0 = arith.constant 0 : index
    %0 = vector.load %arg1[%c0, %c0_0] : memref<16x32xf32, #tpu.memory_space<vmem>>, vector<16x32xf32>
    %c0_1 = arith.constant 0 : index
    %c0_2 = arith.constant 0 : index
    %1 = vector.load %arg2[%c0_1, %c0_2] : memref<32x7xf32, #tpu.memory_space<vmem>>, vector<32x7xf32>
    %cst = arith.constant dense<0.000000e+00> : vector<16x7xf32>
    %2 = tpu.matmul %0, %1, %cst {dimension_numbers = #tpu.dot_dimension_numbers<[1], [0], [0], [1], [0, 0, 1, 1], [], []>} : vector<16x32xf32>, vector<32x7xf32>, vector<16x7xf32> -> vector<16x7xf32>
    %c0_3 = arith.constant 0 : index
    %c0_4 = arith.constant 0 : index
    %3 = vector.load %arg3[%c0_3, %c0_4] : memref<1x7xf32, #tpu.memory_space<vmem>>, vector<1x7xf32>
    %4 = vector.broadcast %3 : vector<1x7xf32> to vector<16x7xf32>
    %5 = arith.addf %2, %4 : vector<16x7xf32>
    %6 = arith.negf %5 : vector<16x7xf32>
    %7 = math.exp %6 : vector<16x7xf32>
    %cst_5 = arith.constant 1.000000e+00 : f32
    %8 = vector.broadcast %cst_5 : f32 to vector<16x7xf32>
    %9 = arith.addf %8, %7 : vector<16x7xf32>
    %10 = arith.divf %8, %9 : vector<16x7xf32>
    %c0_6 = arith.constant 0 : index
    %c0_7 = arith.constant 0 : index
    %11 = vector.load %arg4[%c0_6, %c0_7] : memref<7x24xf32, #tpu.memory_space<vmem>>, vector<7x24xf32>
    %cst_8 = arith.constant dense<0.000000e+00> : vector<16x24xf32>
    %12 = tpu.matmul %10, %11, %cst_8 {dimension_numbers = #tpu.dot_dimension_numbers<[1], [0], [0], [1], [0, 0, 1, 1], [], []>} : vector<16x7xf32>, vector<7x24xf32>, vector<16x24xf32> -> vector<16x24xf32>
    %c0_9 = arith.constant 0 : index
    %c0_10 = arith.constant 0 : index
    %13 = vector.load %arg5[%c0_9, %c0_10] : memref<1x24xf32, #tpu.memory_space<vmem>>, vector<1x24xf32>
    %14 = vector.broadcast %13 : vector<1x24xf32> to vector<16x24xf32>
    %15 = arith.addf %12, %14 : vector<16x24xf32>
    %16 = vector.extract_strided_slice %15 {offsets = [0, 0], sizes = [16, 8], strides = [1, 1]} : vector<16x24xf32> to vector<16x8xf32>
    %17 = vector.extract_strided_slice %15 {offsets = [0, 8], sizes = [16, 8], strides = [1, 1]} : vector<16x24xf32> to vector<16x8xf32>
    %18 = arith.mulf %16, %17 : vector<16x8xf32>
    %19 = vector.extract_strided_slice %15 {offsets = [0, 16], sizes = [16, 8], strides = [1, 1]} : vector<16x24xf32> to vector<16x8xf32>
    %20 = arith.mulf %18, %19 : vector<16x8xf32>
    %c0_11 = arith.constant 0 : index
    %c0_12 = arith.constant 0 : index
    %21 = vector.load %arg6[%c0_11, %c0_12] : memref<8x10xf32, #tpu.memory_space<vmem>>, vector<8x10xf32>
    %cst_13 = arith.constant dense<0.000000e+00> : vector<16x10xf32>
    %22 = tpu.matmul %20, %21, %cst_13 {dimension_numbers = #tpu.dot_dimension_numbers<[1], [0], [0], [1], [0, 0, 1, 1], [], []>} : vector<16x8xf32>, vector<8x10xf32>, vector<16x10xf32> -> vector<16x10xf32>
    %c0_14 = arith.constant 0 : index
    %c0_15 = arith.constant 0 : index
    %23 = vector.load %arg7[%c0_14, %c0_15] : memref<16x10xf32, #tpu.memory_space<vmem>>, vector<16x10xf32>
    tpu.vector_store %arg7[%c0_14, %c0_15], %22 {strides = array<i32>} : memref<16x10xf32, #tpu.memory_space<vmem>>, vector<16x10xf32>,
    return
  }
  func.func @transform_0(%arg0: i32) -> (i32, i32) {
    %c0_i32 = arith.constant 0 : i32
    %c0_i32_0 = arith.constant 0 : i32
    return %arg0, %c0_i32 : i32, i32
  }
  func.func @transform_1(%arg0: i32) -> (i32, i32) {
    %c0_i32 = arith.constant 0 : i32
    %c0_i32_0 = arith.constant 0 : i32
    %c0_i32_1 = arith.constant 0 : i32
    return %c0_i32, %c0_i32_0 : i32, i32
  }
  func.func @transform_2(%arg0: i32) -> (i32, i32) {
    %c0_i32 = arith.constant 0 : i32
    %c0_i32_0 = arith.constant 0 : i32
    %c0_i32_1 = arith.constant 0 : i32
    return %c0_i32, %c0_i32_0 : i32, i32
  }
  func.func @transform_3(%arg0: i32) -> (i32, i32) {
    %c0_i32 = arith.constant 0 : i32
    %c0_i32_0 = arith.constant 0 : i32
    %c0_i32_1 = arith.constant 0 : i32
    return %c0_i32, %c0_i32_0 : i32, i32
  }
  func.func @transform_4(%arg0: i32) -> (i32, i32) {
    %c0_i32 = arith.constant 0 : i32
    %c0_i32_0 = arith.constant 0 : i32
    %c0_i32_1 = arith.constant 0 : i32
    return %c0_i32, %c0_i32_0 : i32, i32
  }
  func.func @transform_5(%arg0: i32) -> (i32, i32) {
    %c0_i32 = arith.constant 0 : i32
    %c0_i32_0 = arith.constant 0 : i32
    %c0_i32_1 = arith.constant 0 : i32
    return %c0_i32, %c0_i32_0 : i32, i32
  }
  func.func @transform_6(%arg0: i32) -> (i32, i32) {
    %c0_i32 = arith.constant 0 : i32
    %c0_i32_0 = arith.constant 0 : i32
    return %arg0, %c0_i32 : i32, i32
  }
}

</mosaic_0001>

<bundles_post_ra>
// kernel: tpu_custom_call.1
= control target key start
LH: loop header
LB: loop body
LE: loop exit
PB: predicated region body
PF: predicated region fallthrough
CT: control target
= control target key end

     0   :  { %s340_s0 = inlined_call_operand.vmem [shape: f32[16,32], index: 0, kind: input, shape index: {}]   ;;  %s341_s1 = inlined_call_operand.vmem [shape: f32[32,7], index: 1, kind: input, shape index: {}]   ;;  %s342_s2 = inlined_call_operand.vmem [shape: f32[1,7], index: 2, kind: input, shape index: {}]   ;;  %s343_s3 = inlined_call_operand.vmem [shape: f32[7,24], index: 3, kind: input, shape index: {}]   ;;  %s344_s4 = inlined_call_operand.vmem [shape: f32[1,24], index: 4, kind: input, shape index: {}]   ;;  %s345_s5 = inlined_call_operand.vmem [shape: f32[8,10], index: 5, kind: input, shape index: {}]   ;;  %s346_s6 = inlined_call_operand.hbm [shape: f32[16,10], index: 6, kind: output, shape index: {}]  }
   0x1   :  { %v29_v0 = vld [vmem:[%s341_s1 + $0x18] sm:$0xff]  ;;  %v28_v1 = vld [vmem:[%s341_s1 + $0x10] sm:$0xff]  ;;  %v27_v2 = vld [vmem:[%s341_s1 + $0x8] sm:$0xff] }
   0x2   :  { %53 = vmatpush.msra.mxu0 %v29_v0  ;;  %220 = vmatpush.msra.mxu3 %v29_v0 }
   0x4   :  { %54 = vmatpush.msra.mxu0 %v28_v1  ;;  %221 = vmatpush.msra.mxu3 %v28_v1 }
   0x5   :  { %11 = vsyncpa [#allocation3], 0  ;;  %v26_v3 = vld [vmem:[%s341_s1] sm:$0xff]  ;;  %vm34_vm0 = vcmask 261120   ;;  %v25_v5 = vld [vmem:[%s340_s0 + $0x8] sm:$0xff]  ;;  %vm114_vm1 = vcmask 1046528  }
   0x6   :  { %55 = vmatpush.msra.mxu0 %v27_v2  ;;  %222 = vmatpush.msra.mxu3 %v27_v2  ;;  %v24_v4 = vld [vmem:[%s340_s0] sm:$0xff]  ;;  %vm107_vm5 = vcmask 56320   ;;  %s266_s12 = smov 112   ;;  %vm160_vm11 = vcmask 64512   ;;  %vm190_vm12 = vcmask 80896   ;;  %s268_s18 = smov 128  }
   0x7   :  { %v102_v6 = vld [vmem:[%s343_s3] sm:$0x7f]  ;;  %s265_s3 = smov 120   ;;  %s269_s19 = smov 8  }
   0x8   :  { %56 = vmatpush.msra.mxu0 %v26_v3  ;;  %223 = vmatpush.msra.mxu3 %v26_v3  ;;  %v229_v7 = vld [vmem:[%s342_s2] ss:$0 sm:$0xff] }
   0x9   :  { %211 = vmatmul.msk.f32.vlgmr.msra.gmra.mxu0 %vm34_vm0, %v24_v4  ;;  %212 = vmatmul.msk.f32.vlgmr.msra.gmra.mxu3 %vm34_vm0, %v25_v5  ;;  %v230_v38 = vld [vmem:[%s344_s4] ss:$0 sm:$0xff]  ;;  %s267_s4 = smov [#allocation2]  }
   0xa   :  { %215 = vmatpush.msk.msra.mxu1 %vm114_vm1, %v102_v6  ;;  %v159_v43 = vld [vmem:[%s345_s5] sm:$0xff]  ;;  %s197_s15 = sshll.u32 %s267_s4, 4  ;;  %s199_s5 = sshll.u32 %s346_s6, 4  ;;  %s198_s15 = int_to_ptr.vmem [resolvable:$true] %s197_s15  ;;  %s200_s5 = int_to_ptr.hbm [resolvable:$true] %s199_s5 }
   0xb   :  { %182 = vmatpush.msra.mxu2 %v159_v43 }
  0x86   :  { %v58_v8 = vpop.f32.mrf.mxu0 }
  0x87   :  { %v59_v9 = vadd.f32 %v229_v7, %v58_v8 }
  0x89   :  { %v213_v10 = vmul.f32 -1.442695, %v59_v9 }
  0x8b   :  { %231 = vpow2.f32 %v213_v10 }
  0x8c   :  { %v61_v11 = vpop.f32.mrf.mxu3 }
  0x8d   :  { %v62_v12 = vadd.f32 %v229_v7, %v61_v11 }
  0x8f   :  { %v214_v13 = vmul.f32 -1.442695, %v62_v12 }
  0x91   :  { %v232_v14 = vpop.eup %231  ;;  %233 = vpow2.f32 %v214_v13 }
  0x92   :  { %v70_v15 = vadd.f32 1.0, %v232_v14 }
  0x94   :  { %235 = vrcp.f32 %v70_v15  ;;  %v83_v21 = vand.u32 2147483648, %v70_v15  ;;  %v81_v23 = vand.u32 2147483647, %v70_v15  ;;  %vm77_vm3 = vweird.f32 %v70_v15 }
  0x96   :  { %v84_v27 = vor.u32 1.1754944e-38, %v83_v21  ;;  %vm82_vm6 = vcmp.eq.f32.partialorder %v81_v23, 8.507059e+37 }
  0x97   :  { %v234_v16 = vpop.eup %233 }
  0x98   :  { %v71_v17 = vadd.f32 1.0, %v234_v16 }
  0x9a   :  { %v236_v18 = vpop.eup %235  ;;  %237 = vrcp.f32 %v71_v17  ;;  %v98_v32 = vand.u32 2147483648, %v71_v17  ;;  %vm92_vm8 = vweird.f32 %v71_v17  ;;  %v96_v34 = vand.u32 2147483647, %v71_v17 }
  0x9b   :  { %v73_v19 = vmul.f32 %v236_v18, %v70_v15  ;;  %vm78_vm2 = vweird.f32 %v236_v18 }
  0x9c   :  { %vm79_vm4 = vmor %vm77_vm3, %vm78_vm2  ;;  %v99_v36 = vor.u32 1.1754944e-38, %v98_v32  ;;  %vm97_vm10 = vcmp.eq.f32.partialorder %v96_v34, 8.507059e+37 }
  0x9d   :  { %v74_v20 = vsub.f32 1.0, %v73_v19 }
  0x9f   :  { %v75_v22 = vmul.f32 %v236_v18, %v74_v20 }
  0xa0   :  { %v238_v24 = vpop.eup %237 }
  0xa1   :  { %v76_v25 = vadd.f32 %v236_v18, %v75_v22  ;;  %v88_v26 = vmul.f32 %v238_v24, %v71_v17  ;;  %vm93_vm7 = vweird.f32 %v238_v24 }
  0xa2   :  { %vm94_vm9 = vmor %vm92_vm8, %vm93_vm7 }
  0xa3   :  { %v80_v28 = vsel %vm79_vm4, %v236_v18, %v76_v25  ;;  %v89_v29 = vsub.f32 1.0, %v88_v26 }
  0xa4   :  { %v85_v30 = vsel %vm82_vm6, %v84_v27, %v80_v28 }
  0xa5   :  { %216 = vmatmul.msk.f32.vlgmr.msra.gmra.mxu1 %vm107_vm5, %v85_v30  ;;  %v90_v31 = vmul.f32 %v238_v24, %v89_v29 }
  0xa7   :  { %v91_v33 = vadd.f32 %v238_v24, %v90_v31 }
  0xa9   :  { %v95_v35 = vsel %vm94_vm9, %v238_v24, %v91_v33 }
  0xaa   :  { %v100_v37 = vsel %vm97_vm10, %v99_v36, %v95_v35 }
  0xad   :  { %217 = vmatmul.msk.f32.gmra.mxu1 %vm107_vm5, %v100_v37 }
 0x122   :  { %v135_v39 = vpop.f32.mrf.mxu1 }
 0x123   :  { %v136_v40 = vadd.f32 %v230_v38, %v135_v39 }
 0x125   :  { %143 = vrot.lane.b32.xlu0 %v136_v40, %s265_s3 }
 0x12a   :  { %v138_v41 = vpop.f32.mrf.mxu1 }
 0x12b   :  { %v139_v42 = vadd.f32 %v230_v38, %v138_v41 }
 0x12d   :  { %145 = vrot.lane.b32.xlu1 %v139_v42, %s265_s3  ;;  %151 = vrot.lane.b32.xlu0 %v136_v40, %s266_s12 }
 0x135   :  { %153 = vrot.lane.b32.xlu1 %v139_v42, %s266_s12 }
 0x197   :  { %v144_v44 = vpop.permute.xlu0 %143 }
 0x198   :  { %v149_v45 = vmul.f32 %v144_v44, %v136_v40 }
 0x19f   :  { %v146_v46 = vpop.permute.xlu1 %145  ;;  %v152_v47 = vpop.permute.xlu0 %151 }
 0x1a0   :  { %v157_v48 = vmul.f32 %v152_v47, %v149_v45  ;;  %v150_v49 = vmul.f32 %v146_v46, %v139_v42 }
 0x1a2   :  { %218 = vmatmul.msk.f32.vlgmr.msra.gmra.mxu2 %vm160_vm11, %v157_v48 }
 0x1a7   :  { %v154_v50 = vpop.permute.xlu1 %153 }
 0x1a8   :  { %v158_v51 = vmul.f32 %v154_v50, %v150_v49 }
 0x1aa   :  { %219 = vmatmul.msk.f32.gmra.mxu2 %vm160_vm11, %v158_v51 }
 0x225   :  { %v184_v52 = vpop.f32.mrf.mxu2 }
 0x226   :  { %191 = vst.msk [vmem:[#allocation2] sm:$0xff] %vm190_vm12, %v184_v52 }
 0x22d   :  { %v187_v53 = vpop.f32.mrf.mxu2 }
 0x22e   :  { %192 = vst.msk [vmem:[#allocation2 + $0x8] sm:$0xff] %vm190_vm12, %v187_v53 }
 0x22f   :  { %205 = dma.vmem_to_hbm [thread:$0]  %s198_s15, 256, %s200_s5, [#allocation3], %s268_s18, %s268_s18, %s269_s19  }
 0x230   :  { %263 = dma.done.wait [#allocation3], 256  }
 0x231   :  { %264 = vsyncadd [#allocation3], 4294967040 }
 0x232   :  { %210 = vsyncpa [#allocation3], 1 }

</bundles_post_ra>
